<compile_context>
chip_gen: v7x
topology: tpu7x:2x2x1
jax: 0.10.0
libtpu: 0.0.40
codegen_flags: <defaults>
</compile_context>

<pallas_src>
from functools import partial

import jax
import jax.numpy as jnp
from jax.experimental import pallas as pl
from jax.experimental.pallas import tpu as pltpu

LN_EPS = 1e-7  # DeBERTa layer_norm_eps default
VMEM_LIMIT = 48 * 1024 * 1024  # > v5e/v6e scoped defaults (16/32 MiB), < v7x physical (64 MiB)


# --------------------------------------------------------------------------------------
# Kernel 1: fused gather + embedding LayerNorm + masked sequence mean-pool
# grid = (batch blocks ["parallel"], sequence blocks ["arbitrary" reduction])
# --------------------------------------------------------------------------------------
def embed_pool_kernel(ids_ref,      # (tb, ts, 1) int32 : token ids; padded tokens == vocab sentinel
                      vocab_ref,    # (V, H)  bf16      : word-embedding table (VMEM resident)
                      pos_ref,      # (S, H)  bf16      : absolute position embeddings (VMEM resident)
                      gamma_ref,    # (1, H)  f32       : LayerNorm gamma
                      beta_ref,     # (1, H)  f32       : LayerNorm beta
                      emb_ref,      # (tb, H) f32 out   : mean-pooled embedding-layer output
                      acc_ref,      # (tb, H) f32 scratch : sum_t(mask * (x-mu)*rsqrt(var))
                      msum_ref,     # (tb, 1) f32 scratch : sum_t(mask)
                      *, seq_len):
    k = pl.program_id(1)
    tb, ts, _ = ids_ref.shape
    V, H = vocab_ref.shape

    @pl.when(k == 0)
    def _():
        acc_ref[...] = jnp.zeros_like(acc_ref)
        msum_ref[...] = jnp.zeros_like(msum_ref)

    ids = ids_ref[...]                                            # (tb, ts, 1) int32
    # MaskedLayerNorm mask, derived from the sentinel id (no separate mask operand streamed).
    valid = jnp.where(ids < V, 1.0, 0.0)                          # (tb, ts, 1) f32

    # --- fused word-embedding gather: one-hot(ids) @ table on the MXU (exact for {0,1} rows) ---
    vocab_iota = jax.lax.broadcasted_iota(jnp.int32, (tb, ts, V), 2)
    onehot = jnp.where(vocab_iota == ids, 1.0, 0.0).astype(jnp.bfloat16)     # (tb, ts, V)
    wg = jnp.dot(onehot.reshape(tb * ts, V), vocab_ref[...],
                 preferred_element_type=jnp.float32)              # (tb*ts, H) f32

    # absolute position embeddings: resident (S,H) table, sliced per sequence block
    start = pl.multiple_of(k * ts, ts)
    pos = pos_ref[pl.ds(start, ts), :].astype(jnp.float32)        # (ts, H)
    x = wg.reshape(tb, ts, H) + pos[None, :, :]                   # (tb, ts, H) f32

    # --- DeBERTa embedding LayerNorm over hidden (gamma/beta deferred to after the reduction) ---
    mu = jnp.mean(x, axis=-1, keepdims=True)                      # (tb, ts, 1)
    xc = x - mu
    var = jnp.mean(xc * xc, axis=-1, keepdims=True)
    scale = valid * jax.lax.rsqrt(var + LN_EPS)                   # mask folded into the LN scale
    acc_ref[...] += jnp.sum(xc * scale, axis=1)                   # (tb, H)
    msum_ref[...] += jnp.sum(valid, axis=1)                       # (tb, 1)

    @pl.when(k == pl.num_programs(1) - 1)
    def _():
        # encoder_layer.mean(1) divides by S with padding included, exactly like torch.
        inv_s = 1.0 / seq_len
        emb_ref[...] = (gamma_ref[...] * acc_ref[...]
                        + beta_ref[...] * msum_ref[...]) * inv_s


# --------------------------------------------------------------------------------------
# Kernel 2: ProjectionHead on the pooled (B, H) embedding (tiny; kept out of the streaming kernel)
# --------------------------------------------------------------------------------------
def projection_kernel(emb_ref, w1_ref, b1_ref, w2_ref, b2_ref, proj_ref):
    h = jnp.dot(emb_ref[...].astype(jnp.bfloat16), w1_ref[...],
                preferred_element_type=jnp.float32) + b1_ref[...]
    h = jnp.maximum(h, 0.0)
    p = jnp.dot(h.astype(jnp.bfloat16), w2_ref[...],
                preferred_element_type=jnp.float32) + b2_ref[...]
    # padded columns of W2/b2 are zero -> padded p columns are zero -> the norm is unaffected.
    ss = jnp.sum(p * p, axis=-1, keepdims=True)
    proj_ref[...] = p * jax.lax.rsqrt(jnp.maximum(ss, 1e-24))     # == p / max(||p||, 1e-12)


# --------------------------------------------------------------------------------------
# Wrappers
# --------------------------------------------------------------------------------------
def prepare_params(p):
    """One-time device-side preparation (bf16 casts + lane-dense padding). NOT per-forward work."""
    H = p["word_emb"].shape[1]
    low = p["w2"].shape[1]
    low_p = max(128, ((low + 127) // 128) * 128)
    return dict(
        word_emb=p["word_emb"].astype(jnp.bfloat16),
        pos_emb=p["pos_emb"].astype(jnp.bfloat16),
        ln_gamma=p["ln_gamma"].astype(jnp.float32),
        ln_beta=p["ln_beta"].astype(jnp.float32),
        w1=p["w1"].astype(jnp.bfloat16),
        b1=p["b1"].astype(jnp.float32),
        w2=jnp.zeros((H, low_p), jnp.bfloat16).at[:, :low].set(p["w2"].astype(jnp.bfloat16)),
        b2=jnp.zeros((1, low_p), jnp.float32).at[:, :low].set(p["b2"].astype(jnp.float32)),
        low_dim=low,
    )


def deberta_ssl_forward(input_ids, attention_mask, prep, *, tb=None, ts=None):
    B, S = input_ids.shape
    V, H = prep["word_emb"].shape
    low_p = prep["w2"].shape[1]
    low = prep["low_dim"]

    # >=2 "parallel" batch blocks so v7x's two TensorCores both get work; ts bounds the in-kernel
    # working set (re-derive tb*ts for H=768 under the 64 MiB / 128 MiB VMEM budgets).
    if tb is None:
        tb = B // 2 if (B >= 16 and (B // 2) % 8 == 0) else B
    if ts is None:
        ts = S if S <= 128 else 128
    assert B % tb == 0 and (tb % 8 == 0 or tb == B)
    assert S % ts == 0 and ts % 8 == 0

    # Remap padded tokens to the sentinel id == V: the kernel derives the mask from it and the
    # one-hot gather yields a zero word vector for them.  The (B,S,1) int32 ids block is the only
    # per-token operand streamed from HBM (4 B/token; its VMEM tile is lane-padded but is still
    # ~3x smaller than the (tb,ts,H) bf16 embedding stream it replaces, and ~384x less HBM).
    ids3 = jnp.where(attention_mask > 0, input_ids, V).astype(jnp.int32)[..., None]

    emb = pl.pallas_call(
        partial(embed_pool_kernel, seq_len=S),
        out_shape=jax.ShapeDtypeStruct((B, H), jnp.float32),
        grid_spec=pltpu.PrefetchScalarGridSpec(
            num_scalar_prefetch=0,
            grid=(B // tb, S // ts),
            in_specs=[
                pl.BlockSpec((tb, ts, 1), lambda i, k: (i, k, 0)),   # ids (+ mask sentinel)
                pl.BlockSpec((V, H),      lambda i, k: (0, 0)),      # word-emb table (resident)
                pl.BlockSpec((S, H),      lambda i, k: (0, 0)),      # pos-emb table (resident)
                pl.BlockSpec((1, H),      lambda i, k: (0, 0)),      # LN gamma
                pl.BlockSpec((1, H),      lambda i, k: (0, 0)),      # LN beta
            ],
            out_specs=pl.BlockSpec((tb, H), lambda i, k: (i, 0)),    # pooled embedding
            scratch_shapes=[pltpu.VMEM((tb, H), jnp.float32),
                            pltpu.VMEM((tb, 1), jnp.float32)],
        ),
        compiler_params=pltpu.CompilerParams(
            dimension_semantics=("parallel", "arbitrary"),
            vmem_limit_bytes=VMEM_LIMIT),
    )(ids3, prep["word_emb"], prep["pos_emb"], prep["ln_gamma"], prep["ln_beta"])

    proj_p = pl.pallas_call(
        projection_kernel,
        out_shape=jax.ShapeDtypeStruct((B, low_p), jnp.float32),
        grid=(1,),
        in_specs=[
            pl.BlockSpec((B, H),     lambda i: (0, 0)),
            pl.BlockSpec((H, H),     lambda i: (0, 0)),
            pl.BlockSpec((1, H),     lambda i: (0, 0)),
            pl.BlockSpec((H, low_p), lambda i: (0, 0)),
            pl.BlockSpec((1, low_p), lambda i: (0, 0)),
        ],
        out_specs=pl.BlockSpec((B, low_p), lambda i: (0, 0)),
        compiler_params=pltpu.CompilerParams(
            dimension_semantics=("arbitrary",),
            vmem_limit_bytes=VMEM_LIMIT),
    )(emb, prep["w1"], prep["b1"], prep["w2"], prep["b2"])

    return emb, proj_p[:, :low]


# --------------------------------------------------------------------------------------
# Init + pure-JAX reference
# --------------------------------------------------------------------------------------
def init_params(key, *, vocab=64, max_pos=64, hidden=128, low_dim=64):
    ks = jax.random.split(key, 4)
    s = 0.02
    return dict(
        word_emb=s * jax.random.normal(ks[0], (vocab, hidden), jnp.float32),
        pos_emb=s * jax.random.normal(ks[1], (max_pos, hidden), jnp.float32),
        ln_gamma=jnp.ones((1, hidden), jnp.float32),
        ln_beta=jnp.zeros((1, hidden), jnp.float32),
        w1=s * jax.random.normal(ks[2], (hidden, hidden), jnp.float32),
        b1=jnp.zeros((1, hidden), jnp.float32),
        w2=s * jax.random.normal(ks[3], (hidden, low_dim), jnp.float32),
        b2=jnp.zeros((1, low_dim), jnp.float32),
    )


def ref_forward(input_ids, attention_mask, p):
    """Pure-JAX reference mirroring the kernel's intended numerics (bf16 tables / bf16 MXU matmuls)."""
    S = input_ids.shape[1]
    word = p["word_emb"].astype(jnp.bfloat16).astype(jnp.float32)[input_ids]
    pos = p["pos_emb"][:S].astype(jnp.bfloat16).astype(jnp.float32)
    emb = word + pos[None]
    mu = emb.mean(-1, keepdims=True)
    var = ((emb - mu) ** 2).mean(-1, keepdims=True)
    y = (emb - mu) / jnp.sqrt(var + LN_EPS) * p["ln_gamma"][0] + p["ln_beta"][0]
    y = y * attention_mask[..., None].astype(jnp.float32)
    pooled = y.mean(1)
    h = jnp.maximum(
        jnp.dot(pooled.astype(jnp.bfloat16), p["w1"].astype(jnp.bfloat16),
                preferred_element_type=jnp.float32) + p["b1"][0], 0.0)
    proj = jnp.dot(h.astype(jnp.bfloat16), p["w2"].astype(jnp.bfloat16),
                   preferred_element_type=jnp.float32) + p["b2"][0]
    proj = proj / jnp.maximum(jnp.linalg.norm(proj, axis=-1, keepdims=True), 1e-12)
    return pooled, proj


if __name__ == "__main__":
    B, S, VOCAB, HIDDEN, LOW = 16, 32, 64, 128, 64
    key = jax.random.PRNGKey(0)
    k_ids, k_params = jax.random.split(key)

    params = init_params(k_params, vocab=VOCAB, max_pos=S, hidden=HIDDEN, low_dim=LOW)
    prep = prepare_params(params)   # one-time bf16 cast + padding (kept out of the forward path)

    input_ids = jax.random.randint(k_ids, (B, S), 0, VOCAB, dtype=jnp.int32)
    # attention_mask: last four tokens of every even-indexed example are padding.
    attention_mask = jnp.ones((B, S), jnp.int32).at[::2, -4:].set(0)

    # tb=8 -> 2 "parallel" batch blocks (both v7x TCs); ts=16 exercises the sequence accumulator.
    embedding, projection = deberta_ssl_forward(input_ids, attention_mask, prep, tb=8, ts=16)
    jax.block_until_ready((embedding, projection))

    emb_ref, proj_ref = ref_forward(input_ids, attention_mask, params)
    assert embedding.shape == (B, HIDDEN) and projection.shape == (B, LOW)
    assert jnp.allclose(embedding, emb_ref, rtol=1e-2, atol=1e-2), \
        float(jnp.max(jnp.abs(embedding - emb_ref)))
    assert jnp.allclose(projection, proj_ref, rtol=1e-2, atol=1e-2), \
        float(jnp.max(jnp.abs(projection - proj_ref)))

    print("KERNEL_OK")
</pallas_src>

<mosaic_0001>
module attributes {stable_mosaic.version = 11 : i64} {
  func.func @embed_pool_kernel(%arg0: i32, %arg1: i32, %arg2: memref<8x16x1xi32, #tpu.memory_space<vmem>>, %arg3: memref<64x128xbf16, #tpu.memory_space<vmem>>, %arg4: memref<32x128xbf16, #tpu.memory_space<vmem>>, %arg5: memref<1x128xf32, #tpu.memory_space<vmem>>, %arg6: memref<1x128xf32, #tpu.memory_space<vmem>>, %arg7: memref<8x128xf32, #tpu.memory_space<vmem>>, %arg8: memref<8x128xf32, #tpu.memory_space<vmem>>, %arg9: memref<8x1xf32, #tpu.memory_space<vmem>>) attributes {dimension_semantics = [#tpu.dimension_semantics<parallel>, #tpu.dimension_semantics<arbitrary>], iteration_bounds = array<i64: 2, 2>, scalar_prefetch = 0 : i64, scratch_operands = 2 : i64, tpu.core_type = #tpu.core_type<tc>, window_params = [{transform_indices = @transform_0, window_bounds = array<i64: 8, 16, 1>}, {pipeline_mode = #tpu.pipeline_mode<synchronous>, transform_indices = @transform_1, window_bounds = array<i64: 64, 128>}, {pipeline_mode = #tpu.pipeline_mode<synchronous>, transform_indices = @transform_2, window_bounds = array<i64: 32, 128>}, {pipeline_mode = #tpu.pipeline_mode<synchronous>, transform_indices = @transform_3, window_bounds = array<i64: 1, 128>}, {pipeline_mode = #tpu.pipeline_mode<synchronous>, transform_indices = @transform_4, window_bounds = array<i64: 1, 128>}, {transform_indices = @transform_5, window_bounds = array<i64: 8, 128>}]} {
    %c0_i32 = arith.constant 0 : i32
    %0 = arith.cmpi eq, %arg1, %c0_i32 : i32
    %1 = arith.extui %0 : i1 to i32
    %c0_i32_0 = arith.constant 0 : i32
    %2 = arith.cmpi ne, %1, %c0_i32_0 : i32
    scf.if %2 {
      %cst_26 = arith.constant 0.000000e+00 : f32
      %56 = vector.broadcast %cst_26 : f32 to vector<8x128xf32>
      %c0_27 = arith.constant 0 : index
      %c0_28 = arith.constant 0 : index
      %57 = vector.load %arg8[%c0_27, %c0_28] : memref<8x128xf32, #tpu.memory_space<vmem>>, vector<8x128xf32>
      tpu.vector_store %arg8[%c0_27, %c0_28], %56 {strides = array<i32>} : memref<8x128xf32, #tpu.memory_space<vmem>>, vector<8x128xf32>,
      %cst_29 = arith.constant 0.000000e+00 : f32
      %58 = vector.broadcast %cst_29 : f32 to vector<8x1xf32>
      %c0_30 = arith.constant 0 : index
      %c0_31 = arith.constant 0 : index
      %59 = vector.load %arg9[%c0_30, %c0_31] : memref<8x1xf32, #tpu.memory_space<vmem>>, vector<8x1xf32>
      tpu.vector_store %arg9[%c0_30, %c0_31], %58 {strides = array<i32>} : memref<8x1xf32, #tpu.memory_space<vmem>>, vector<8x1xf32>,
    } else {
    }
    %c0 = arith.constant 0 : index
    %c0_1 = arith.constant 0 : index
    %c0_2 = arith.constant 0 : index
    %3 = vector.load %arg2[%c0, %c0_1, %c0_2] : memref<8x16x1xi32, #tpu.memory_space<vmem>>, vector<8x16x1xi32>
    %c64_i32 = arith.constant 64 : i32
    %4 = vector.broadcast %c64_i32 : i32 to vector<8x16x1xi32>
    %5 = arith.cmpi slt, %3, %4 : vector<8x16x1xi32>
    %cst = arith.constant 1.000000e+00 : f32
    %cst_3 = arith.constant 0.000000e+00 : f32
    %6 = vector.broadcast %cst : f32 to vector<8x16x1xf32>
    %7 = vector.broadcast %cst_3 : f32 to vector<8x16x1xf32>
    %8 = arith.select %5, %6, %7 : vector<8x16x1xi1>, vector<8x16x1xf32>
    %9 = tpu.iota {dimensions = array<i32: 2>} : vector<8x16x64xi32>
    %10 = vector.broadcast %3 : vector<8x16x1xi32> to vector<8x16x64xi32>
    %11 = arith.cmpi eq, %9, %10 : vector<8x16x64xi32>
    %cst_4 = arith.constant 1.000000e+00 : f32
    %cst_5 = arith.constant 0.000000e+00 : f32
    %12 = vector.broadcast %cst_4 : f32 to vector<8x16x64xf32>
    %13 = vector.broadcast %cst_5 : f32 to vector<8x16x64xf32>
    %14 = arith.select %11, %12, %13 : vector<8x16x64xi1>, vector<8x16x64xf32>
    %15 = arith.truncf %14 : vector<8x16x64xf32> to vector<8x16x64xbf16>
    %16 = vector.shape_cast %15 : vector<8x16x64xbf16> to vector<128x64xbf16>
    %c0_6 = arith.constant 0 : index
    %c0_7 = arith.constant 0 : index
    %17 = vector.load %arg3[%c0_6, %c0_7] : memref<64x128xbf16, #tpu.memory_space<vmem>>, vector<64x128xbf16>
    %cst_8 = arith.constant dense<0.000000e+00> : vector<128x128xf32>
    %18 = tpu.matmul %16, %17, %cst_8 {dimension_numbers = #tpu.dot_dimension_numbers<[1], [0], [0], [1], [0, 0, 1, 1], [], []>} : vector<128x64xbf16>, vector<64x128xbf16>, vector<128x128xf32> -> vector<128x128xf32>
    %c16_i32 = arith.constant 16 : i32
    %19 = arith.muli %arg1, %c16_i32 : i32
    %20 = tpu.assume_multiple %19, 16 : i32
    %21 = arith.index_cast %20 : i32 to index
    %c0_9 = arith.constant 0 : index
    %22 = vector.load %arg4[%21, %c0_9] : memref<32x128xbf16, #tpu.memory_space<vmem>>, vector<16x128xbf16>
    %23 = arith.extf %22 : vector<16x128xbf16> to vector<16x128xf32>
    %24 = vector.shape_cast %18 : vector<128x128xf32> to vector<8x16x128xf32>
    %25 = vector.shape_cast %23 : vector<16x128xf32> to vector<1x16x128xf32>
    %26 = vector.broadcast %25 : vector<1x16x128xf32> to vector<8x16x128xf32>
    %27 = arith.addf %24, %26 : vector<8x16x128xf32>
    %cst_10 = arith.constant dense<0.000000e+00> : vector<8x16xf32>
    %28 = vector.multi_reduction <add>, %27, %cst_10 [2] : vector<8x16x128xf32> to vector<8x16xf32>
    %29 = vector.shape_cast %28 : vector<8x16xf32> to vector<8x16x1xf32>
    %cst_11 = arith.constant 1.280000e+02 : f32
    %30 = vector.broadcast %cst_11 : f32 to vector<8x16x1xf32>
    %31 = arith.divf %29, %30 : vector<8x16x1xf32>
    %32 = vector.broadcast %31 : vector<8x16x1xf32> to vector<8x16x128xf32>
    %33 = arith.subf %27, %32 : vector<8x16x128xf32>
    %34 = arith.mulf %33, %33 : vector<8x16x128xf32>
    %cst_12 = arith.constant dense<0.000000e+00> : vector<8x16xf32>
    %35 = vector.multi_reduction <add>, %34, %cst_12 [2] : vector<8x16x128xf32> to vector<8x16xf32>
    %36 = vector.shape_cast %35 : vector<8x16xf32> to vector<8x16x1xf32>
    %cst_13 = arith.constant 1.280000e+02 : f32
    %37 = vector.broadcast %cst_13 : f32 to vector<8x16x1xf32>
    %38 = arith.divf %36, %37 : vector<8x16x1xf32>
    %cst_14 = arith.constant 1.000000e-07 : f32
    %39 = vector.broadcast %cst_14 : f32 to vector<8x16x1xf32>
    %40 = arith.addf %38, %39 : vector<8x16x1xf32>
    %41 = math.rsqrt %40 : vector<8x16x1xf32>
    %42 = arith.mulf %8, %41 : vector<8x16x1xf32>
    %c0_15 = arith.constant 0 : index
    %c0_16 = arith.constant 0 : index
    %43 = vector.load %arg8[%c0_15, %c0_16] : memref<8x128xf32, #tpu.memory_space<vmem>>, vector<8x128xf32>
    %44 = vector.broadcast %42 : vector<8x16x1xf32> to vector<8x16x128xf32>
    %45 = arith.mulf %33, %44 : vector<8x16x128xf32>
    %cst_17 = arith.constant dense<0.000000e+00> : vector<8x128xf32>
    %46 = vector.multi_reduction <add>, %45, %cst_17 [1] : vector<8x16x128xf32> to vector<8x128xf32>
    %47 = arith.addf %43, %46 : vector<8x128xf32>
    %c0_18 = arith.constant 0 : index
    %c0_19 = arith.constant 0 : index
    %48 = vector.load %arg8[%c0_18, %c0_19] : memref<8x128xf32, #tpu.memory_space<vmem>>, vector<8x128xf32>
    tpu.vector_store %arg8[%c0_18, %c0_19], %47 {strides = array<i32>} : memref<8x128xf32, #tpu.memory_space<vmem>>, vector<8x128xf32>,
    %c0_20 = arith.constant 0 : index
    %c0_21 = arith.constant 0 : index
    %49 = vector.load %arg9[%c0_20, %c0_21] : memref<8x1xf32, #tpu.memory_space<vmem>>, vector<8x1xf32>
    %cst_22 = arith.constant dense<0.000000e+00> : vector<8x1xf32>
    %50 = vector.multi_reduction <add>, %8, %cst_22 [1] : vector<8x16x1xf32> to vector<8x1xf32>
    %51 = arith.addf %49, %50 : vector<8x1xf32>
    %c0_23 = arith.constant 0 : index
    %c0_24 = arith.constant 0 : index
    %52 = vector.load %arg9[%c0_23, %c0_24] : memref<8x1xf32, #tpu.memory_space<vmem>>, vector<8x1xf32>
    tpu.vector_store %arg9[%c0_23, %c0_24], %51 {strides = array<i32>} : memref<8x1xf32, #tpu.memory_space<vmem>>, vector<8x1xf32>,
    %c1_i32 = arith.constant 1 : i32
    %53 = arith.cmpi eq, %arg1, %c1_i32 : i32
    %54 = arith.extui %53 : i1 to i32
    %c0_i32_25 = arith.constant 0 : i32
    %55 = arith.cmpi ne, %54, %c0_i32_25 : i32
    scf.if %55 {
      %c0_26 = arith.constant 0 : index
      %c0_27 = arith.constant 0 : index
      %56 = vector.load %arg5[%c0_26, %c0_27] : memref<1x128xf32, #tpu.memory_space<vmem>>, vector<1x128xf32>
      %c0_28 = arith.constant 0 : index
      %c0_29 = arith.constant 0 : index
      %57 = vector.load %arg8[%c0_28, %c0_29] : memref<8x128xf32, #tpu.memory_space<vmem>>, vector<8x128xf32>
      %58 = vector.broadcast %56 : vector<1x128xf32> to vector<8x128xf32>
      %59 = arith.mulf %58, %57 : vector<8x128xf32>
      %c0_30 = arith.constant 0 : index
      %c0_31 = arith.constant 0 : index
      %60 = vector.load %arg6[%c0_30, %c0_31] : memref<1x128xf32, #tpu.memory_space<vmem>>, vector<1x128xf32>
      %c0_32 = arith.constant 0 : index
      %c0_33 = arith.constant 0 : index
      %61 = vector.load %arg9[%c0_32, %c0_33] : memref<8x1xf32, #tpu.memory_space<vmem>>, vector<8x1xf32>
      %62 = vector.broadcast %60 : vector<1x128xf32> to vector<8x128xf32>
      %63 = vector.broadcast %61 : vector<8x1xf32> to vector<8x128xf32>
      %64 = arith.mulf %62, %63 : vector<8x128xf32>
      %65 = arith.addf %59, %64 : vector<8x128xf32>
      %cst_34 = arith.constant 3.125000e-02 : f32
      %66 = vector.broadcast %cst_34 : f32 to vector<8x128xf32>
      %67 = arith.mulf %65, %66 : vector<8x128xf32>
      %c0_35 = arith.constant 0 : index
      %c0_36 = arith.constant 0 : index
      %68 = vector.load %arg7[%c0_35, %c0_36] : memref<8x128xf32, #tpu.memory_space<vmem>>, vector<8x128xf32>
      tpu.vector_store %arg7[%c0_35, %c0_36], %67 {strides = array<i32>} : memref<8x128xf32, #tpu.memory_space<vmem>>, vector<8x128xf32>,
    } else {
    }
    return
  }
  func.func @transform_0(%arg0: i32, %arg1: i32) -> (i32, i32, i32) {
    %c0_i32 = arith.constant 0 : i32
    %c0_i32_0 = arith.constant 0 : i32
    return %arg0, %arg1, %c0_i32 : i32, i32, i32
  }
  func.func @transform_1(%arg0: i32, %arg1: i32) -> (i32, i32) {
    %c0_i32 = arith.constant 0 : i32
    %c0_i32_0 = arith.constant 0 : i32
    %c0_i32_1 = arith.constant 0 : i32
    return %c0_i32, %c0_i32_0 : i32, i32
  }
  func.func @transform_2(%arg0: i32, %arg1: i32) -> (i32, i32) {
    %c0_i32 = arith.constant 0 : i32
    %c0_i32_0 = arith.constant 0 : i32
    %c0_i32_1 = arith.constant 0 : i32
    return %c0_i32, %c0_i32_0 : i32, i32
  }
  func.func @transform_3(%arg0: i32, %arg1: i32) -> (i32, i32) {
    %c0_i32 = arith.constant 0 : i32
    %c0_i32_0 = arith.constant 0 : i32
    %c0_i32_1 = arith.constant 0 : i32
    return %c0_i32, %c0_i32_0 : i32, i32
  }
  func.func @transform_4(%arg0: i32, %arg1: i32) -> (i32, i32) {
    %c0_i32 = arith.constant 0 : i32
    %c0_i32_0 = arith.constant 0 : i32
    %c0_i32_1 = arith.constant 0 : i32
    return %c0_i32, %c0_i32_0 : i32, i32
  }
  func.func @transform_5(%arg0: i32, %arg1: i32) -> (i32, i32) {
    %c0_i32 = arith.constant 0 : i32
    %c0_i32_0 = arith.constant 0 : i32
    return %arg0, %c0_i32 : i32, i32
  }
}

</mosaic_0001>

<bundles_post_ra>
// kernel: tpu_custom_call.1
= control target key start
LH: loop header
LB: loop body
LE: loop exit
PB: predicated region body
PF: predicated region fallthrough
CT: control target
= control target key end

     0   :  { %s2121_s0 = inlined_call_operand.vmem [shape: s32[16,32,1], index: 0, kind: input, shape index: {}]   ;;  %s2122_s1 = inlined_call_operand.vmem [shape: bf16[64,128], index: 1, kind: input, shape index: {}]   ;;  %s2123_s2 = inlined_call_operand.vmem [shape: bf16[32,128], index: 2, kind: input, shape index: {}]   ;;  %s2124_s3 = inlined_call_operand.vmem [shape: f32[1,128], index: 3, kind: input, shape index: {}]   ;;  %s2125_s4 = inlined_call_operand.vmem [shape: f32[1,128], index: 4, kind: input, shape index: {}]   ;;  %s2126_s5 = inlined_call_operand.hbm [shape: f32[16,128], index: 5, kind: output, shape index: {}]  }
   0x1   :  { %2128 = sst [smem:[#allocation9_spill]] %s2121_s0 }
   0x2   :  { %10 = vsyncpa [#allocation6], 0 }
   0x3   :  { %12 = vsyncpa [#allocation6 + $0x1], 0  ;;  %s1594_s18 = smov 0   ;;  %s1596_s19 = smov 0  }
   0x4   :  { %s1598_s20 = smov 0   ;;  %s1600_s21 = smov 0  }
   0x5   :  { %s1602_s22 = smov 0   ;;  %s1604_s23 = smov 0  }
   0x6   :  { %s1606_s24 = smov 0   ;;  %s1608_s25 = smov 0  }
   0x7   :  { %s1610_s26 = smov 0   ;;  %s1612_s27 = smov 0  }
   0x8 LB: > { %s1234_s28 = sadd.s32 4294967295, %s1557_s27   ;;  %s1235_s29 = sadd.s32 4294967294, %s1557_s27   ;;  %s1557_s27 = sphi %s1612_s27, %s18_s27   ;;  %s1553_s26 = sphi %s1610_s26, %s2143_s26   ;;  %s1549_s25 = sphi %s1608_s25, %s2142_s25   ;;  %s1545_s24 = sphi %s1606_s24, %s2141_s24   ;;  %s1541_s23 = sphi %s1604_s23, %s2140_s23   ;;  %s1537_s22 = sphi %s1602_s22, %s2139_s22   ;;  %s1533_s21 = sphi %s1600_s21, %s2138_s21   ;;  %s1529_s20 = sphi %s1598_s20, %s2137_s20   ;;  %s1525_s19 = sphi %s1596_s19, %s2136_s19   ;;  %s1521_s18 = sphi %s1594_s18, %s2135_s18  }
   0x9   : > { %s27_s30 = sadd.s32 1, %s1549_s25  ;;  %s30_s6 = sadd.s32 1, %s1553_s26 }
   0xa   : > { %p28_p0 = scmp.ge.s32.totalorder %s27_s30, 2  ;;  %s39_s7 = sadd.s32 1, %s1537_s22 }
   0xb   : > { %p46_p1 = scmp.ne.s32.totalorder %s1537_s22, %s1533_s21  ;;  %p47_p2 = scmp.eq.s32.totalorder %s1557_s27, 0 }
   0xc   : > { %s2145_s30 = smov (%p28_p0, %s27_s30), 0  ;;  %s2147_s6 = smov (!%p28_p0, %s30_s6), %s1553_s26 }
   0xd   : > { %s35_s8 = ssub.s32 %s1549_s25, %s2145_s30  ;;  %p1657_p3 = por %p47_p2, %p46_p1 }
   0xe   : > { %p32_p4 = scmp.ge.s32.totalorder %s2147_s6, 2  ;;  %s149_s10 = sadd.s32 1, %s1529_s20 }
   0xf   : > { %p159_p5 = scmp.ne.s32.totalorder %s1529_s20, %s1525_s19  ;;  %p160_p6 = scmp.eq.s32.totalorder %s1234_s28, 3 }
  0x10   : > { %s2149_s6 = smov (%p32_p4, %s2147_s6), 0  ;;  %p165_p8 = scmp.ne.s32.totalorder %s1525_s19, %s1521_s18 }
  0x11   : > { %2130 = sst [smem:[#allocation8_spill]] %s2149_s6  ;;  %p1666_p7 = por %p160_p6, %p159_p5 }
  0x12   : > { %s34_s12 = ssub.s32 %s1553_s26, %s2149_s6  ;;  %p166_p9 = scmp.eq.s32.totalorder %s1235_s29, 3 }
  0x13   : > { %s36_s13 = sor.u32 %s35_s8, %s34_s12  ;;  %p147_p10 = scmp.eq.s32.totalorder %s34_s12, 0 }
  0x14   : > { %p37_p11 = scmp.eq.s32.totalorder %s36_s13, 0  ;;  %p1674_p12 = por %p166_p9, %p165_p8 }
  0x15   : > { %s1679_s15 = scalar_select %p147_p10, %s1529_s20, %s149_s10  }
  0x16   : > { %s1682_s16 = scalar_select %p37_p11, %s1537_s22, %s39_s7  }
  0x17   : > { %p1237_p13 = scmp.ge.s32.totalorder %s1557_s27, 4 }
  0x19   : > { %194 = sbr.rel (%p1237_p13) target bundleno = 50 (0x32), region = 32 }
  0x20   : > { %197 = sbr.rel (!%p1657_p3) target bundleno = 50 (0x32), region = 36  ;;  %s199_s17 = sand.u32 (%p1657_p3), 1, %s1537_s22  }
  0x21   : > { %s1240_s28 = sshll.u32 (%p1657_p3), %s1549_s25, 1  ;;  %s1238_s29 = sshll.u32 (%p1657_p3), %s199_s17, 7 }
  0x22   : > { %s1268_s8 = sshll.u32 (%p1657_p3), %s1553_s26, 5  ;;  %s2133_s0 = sld [smem:[#allocation9_spill]] (%p1657_p3) }
  0x23   : > { %s205_s12 = sadd.s32 (%p1657_p3), %s1268_s8, %s1240_s28  ;;  %s201_s9 = scalar_lea.vmem (%p1657_p3), [#allocation4], %s1238_s29 }
  0x24   : > { %s1242_s13 = sshll.u32 (%p1657_p3), %s205_s12, 3 }
  0x28   : > { %s1693_s7 = scalar_lea.vmem %s2133_s0, %s1242_s13 }
  0x29   : > { %v265_v0 = vld [vmem:[%s1693_s7] sm:$0xff]  ;;  %v267_v1 = vld [vmem:[%s1693_s7 + $0x8] sm:$0xff] }
  0x2a   : > { %v269_v2 = vld [vmem:[%s1693_s7 + $0x20] sm:$0xff]  ;;  %266 = vst [vmem:[%s201_s9] sm:$0xff] %v265_v0  ;;  %268 = vst [vmem:[%s201_s9 + $0x8] sm:$0xff] %v267_v1  ;;  %v271_v3 = vld [vmem:[%s1693_s7 + $0x28] sm:$0xff] }
  0x2b   : > { %270 = vst [vmem:[%s201_s9 + $0x10] sm:$0xff] %v269_v2  ;;  %v273_v4 = vld [vmem:[%s1693_s7 + $0x40] sm:$0xff]  ;;  %v275_v5 = vld [vmem:[%s1693_s7 + $0x48] sm:$0xff]  ;;  %272 = vst [vmem:[%s201_s9 + $0x18] sm:$0xff] %v271_v3 }
  0x2c   : > { %274 = vst [vmem:[%s201_s9 + $0x20] sm:$0xff] %v273_v4  ;;  %276 = vst [vmem:[%s201_s9 + $0x28] sm:$0xff] %v275_v5  ;;  %v277_v6 = vld [vmem:[%s1693_s7 + $0x60] sm:$0xff]  ;;  %v279_v7 = vld [vmem:[%s1693_s7 + $0x68] sm:$0xff] }
  0x2d   : > { %v281_v8 = vld [vmem:[%s1693_s7 + $0x80] sm:$0xff]  ;;  %278 = vst [vmem:[%s201_s9 + $0x30] sm:$0xff] %v277_v6  ;;  %280 = vst [vmem:[%s201_s9 + $0x38] sm:$0xff] %v279_v7  ;;  %v283_v9 = vld [vmem:[%s1693_s7 + $0x88] sm:$0xff] }
  0x2e   : > { %282 = vst [vmem:[%s201_s9 + $0x40] sm:$0xff] %v281_v8  ;;  %v285_v10 = vld [vmem:[%s1693_s7 + $0xa0] sm:$0xff]  ;;  %v287_v11 = vld [vmem:[%s1693_s7 + $0xa8] sm:$0xff]  ;;  %284 = vst [vmem:[%s201_s9 + $0x48] sm:$0xff] %v283_v9 }
  0x2f   : > { %286 = vst [vmem:[%s201_s9 + $0x50] sm:$0xff] %v285_v10  ;;  %288 = vst [vmem:[%s201_s9 + $0x58] sm:$0xff] %v287_v11  ;;  %v289_v12 = vld [vmem:[%s1693_s7 + $0xc0] sm:$0xff]  ;;  %v291_v13 = vld [vmem:[%s1693_s7 + $0xc8] sm:$0xff] }
  0x30   : > { %v293_v14 = vld [vmem:[%s1693_s7 + $0xe0] sm:$0xff]  ;;  %290 = vst [vmem:[%s201_s9 + $0x60] sm:$0xff] %v289_v12  ;;  %292 = vst [vmem:[%s201_s9 + $0x68] sm:$0xff] %v291_v13  ;;  %v295_v15 = vld [vmem:[%s1693_s7 + $0xe8] sm:$0xff] }
  0x31   : > { %294 = vst [vmem:[%s201_s9 + $0x70] sm:$0xff] %v293_v14  ;;  %296 = vst [vmem:[%s201_s9 + $0x78] sm:$0xff] %v295_v15 }
  0x32 PF: > { %p1243_p0 = scmp.ge.s32.totalorder %s1557_s27, 1  ;;  %p301_p1 = scmp.lt.s32.totalorder %s1557_s27, 5 }
  0x34   : > { %p302_p2 = pnand %p1243_p0, %p301_p1 }
  0x35   : > { %s308_s6 = sand.u32 (!%p302_p2), 1, %s1533_s21   ;;  %s332_s17 = sand.u32 (!%p302_p2), 1, %s1525_s19  }
  0x36   : > { %305 = sbr.rel (%p302_p2) target bundleno = 1049 (0x419), region = 74  ;;  %s1244_s28 = sshll.u32 (!%p302_p2), %s308_s6, 7 }
  0x37   : > { %s1717_s29 = sshll.u32 (!%p302_p2), %s332_s17, 3  ;;  %s1719_s8 = scalar_lea.vmem (!%p302_p2), [#allocation4], %s1244_s28 }
  0x38   : > { %s334_s12 = scalar_lea.vmem (!%p302_p2), [#allocation5], %s1717_s29  ;;  %p1246_p3 = scmp.ne.s32.totalorder (!%p302_p2), %s1541_s23, 0 }
  0x3d   : > { %341 = sbr.rel (%p1246_p3) target bundleno = 68 (0x44), region = 82  ;;  %vm343_vm0 = vcmask (!%p1246_p3), 7168   ;;  %v1559_v16 = vmov (!%p1246_p3), 0.0  }
  0x3e   : > { %342 = vst [vmem:[#allocation2] sm:$0xff] (!%p1246_p3), %v1559_v16  ;;  %344 = vst.msk [vmem:[#allocation3] sm:$0xff] (!%p1246_p3), %vm343_vm0, %v1559_v16 }
  0x44 PF: > { %v347_v17 = vld [vmem:[%s1719_s8 + $0x10] sm:$0xff]  ;;  %vm1018_vm1 = vcmask 7168   ;;  %v345_v18 = vld [vmem:[%s1719_s8] sm:$0xff]  ;;  %v348_v19 = vld [vmem:[%s1719_s8 + $0x18] sm:$0xff]  ;;  %v1560_v20 = vmov 0   ;;  %v1561_v22 = vmov 0.0  }
  0x45   : > { %1409 = vset.pattern.permute.xlu1 %v1560_v20  ;;  %1408 = vset.pattern.permute.xlu0 %v1560_v20  ;;  %vm363_vm2 = vcmp.lt.s32.totalorder %v347_v17, 64  ;;  %vm361_vm3 = vcmp.lt.s32.totalorder %v345_v18, 64  ;;  %vm364_vm4 = vcmp.lt.s32.totalorder %v348_v19, 64  ;;  %v346_v21 = vld [vmem:[%s1719_s8 + $0x8] sm:$0xff]  ;;  %v353_v31 = vld [vmem:[%s1719_s8 + $0x40] sm:$0xff]  ;;  %v356_v34 = vld [vmem:[%s1719_s8 + $0x58] sm:$0xff] }
  0x46   : > { %402 = vperm.xlu1 %1409, %v347_v17   ;;  %v1728_v23 = vsel %vm363_vm2, 1.0, %v1561_v22  ;;  %396 = vperm.xlu0 %1408, %v345_v18   ;;  %v1731_v24 = vsel %vm361_vm3, 1.0, %v1561_v22  ;;  %v1734_v25 = vsel %vm364_vm4, 1.0, %v1561_v22  ;;  %vm362_vm5 = vcmp.lt.s32.totalorder %v346_v21, 64  ;;  %v354_v30 = vld [vmem:[%s1719_s8 + $0x48] sm:$0xff]  ;;  %v355_v38 = vld [vmem:[%s1719_s8 + $0x50] sm:$0xff] }
  0x47   : > { %v1028_v26 = vsel %vm1018_vm1, %v1728_v23, 0.0  ;;  %v1019_v27 = vsel %vm1018_vm1, %v1731_v24, 0.0  ;;  %v1029_v28 = vsel %vm1018_vm1, %v1734_v25, 0.0  ;;  %v1743_v29 = vsel %vm362_vm5, 1.0, %v1561_v22  ;;  %v1758_v39 = vld [vmem:[%s1719_s8 + $0x28] sm:$0xff]  ;;  %v349_v44 = vld [vmem:[%s1719_s8 + $0x20] sm:$0xff] }
  0x48   : > { %v1030_v32 = vadd.f32 %v1029_v28, %v1028_v26  ;;  %v1020_v33 = vsel %vm1018_vm1, %v1743_v29, 0.0  ;;  %vm370_vm6 = vcmp.lt.s32.totalorder %v354_v30, 64  ;;  %vm369_vm7 = vcmp.lt.s32.totalorder %v353_v31, 64  ;;  %v1410_v45 = vld [vmem:[%s2122_s1] sm:$0xff]   ;;  %v1411_v49 = vld [vmem:[%s2122_s1 + $0x8] sm:$0xff]   ;;  %v1412_v62 = vld [vmem:[%s2122_s1 + $0x10] sm:$0xff]  }
  0x49   : > { %v1021_v35 = vadd.f32 %v1020_v33, %v1019_v27  ;;  %v1751_v36 = vsel %vm370_vm6, 1.0, %v1561_v22  ;;  %v1754_v37 = vsel %vm369_vm7, 1.0, %v1561_v22  ;;  %vm372_vm8 = vcmp.lt.s32.totalorder %v356_v34, 64  ;;  %1285 = vmatprep.subr.bf16.mxu0 %v1410_v45  ;;  %1309 = vmatprep.subr.bf16.mxu1 %v1410_v45  ;;  %v352_v59 = vld [vmem:[%s1719_s8 + $0x38] sm:$0xff]  ;;  %v351_v2 = vld [vmem:[%s1719_s8 + $0x30] sm:$0xff]  ;;  %v358_v7 = vld [vmem:[%s1719_s8 + $0x68] sm:$0xff] }
  0x4a   : > { %405 = vperm.xlu1 %1409, %v348_v19   ;;  %v1031_v40 = vrot.slane %v1030_v32, 4  ;;  %399 = vperm.xlu0 %1408, %v346_v21   ;;  %v1056_v41 = vsel %vm1018_vm1, %v1751_v36, 0.0  ;;  %v1055_v42 = vsel %vm1018_vm1, %v1754_v37, 0.0  ;;  %v1765_v43 = vsel %vm372_vm8, 1.0, %v1561_v22  ;;  %v1413_v10 = vld [vmem:[%s2122_s1 + $0x18] sm:$0xff]   ;;  %v357_v13 = vld [vmem:[%s1719_s8 + $0x60] sm:$0xff] }
  0x4b   : > { %v1022_v46 = vrot.slane %v1021_v35, 4  ;;  %v1771_v47 = vadd.f32 %v1056_v41, %v1055_v42  ;;  %v1065_v48 = vsel %vm1018_vm1, %v1765_v43, 0.0  ;;  %vm371_vm9 = vcmp.lt.s32.totalorder %v355_v38, 64  ;;  %1286 = vmatpush3.bf16.msra.mxu0 %v1410_v45  ;;  %1313 = vmatpush3.bf16.msra.mxu1 %v1410_v45  ;;  %v360_v17 = vld [vmem:[%s1719_s8 + $0x78] sm:$0xff]  ;;  %v359_v21 = vld [vmem:[%s1719_s8 + $0x70] sm:$0xff]  ;;  %s1259_s8 = sshll.u32 %s1541_s23, 4 }
  0x4c   : > { %v1032_v50 = vadd.f32 %v1031_v40, %v1030_v32  ;;  %v1779_v51 = vsel %vm371_vm9, 1.0, %v1561_v22  ;;  %vm366_vm10 = vcmp.lt.s32.totalorder %v1758_v39, 64  ;;  %vm365_vm11 = vcmp.lt.s32.totalorder %v349_v44, 64  ;;  %1287 = vmatprep.subr.bf16.mxu0 %v1411_v49  ;;  %1310 = vmatprep.subr.bf16.mxu1 %v1411_v49  ;;  %s638_s13 = sshra.s32 %s1259_s8, 3  ;;  %p1261_p4 = scmp.ne.s32.totalorder %s1541_s23, 1 }
  0x4d   : > { %v1023_v52 = vadd.f32 %v1022_v46, %v1021_v35  ;;  %v1064_v53 = vsel %vm1018_vm1, %v1779_v51, 0.0  ;;  %v1785_v54 = vsel %vm366_vm10, 1.0, %v1561_v22  ;;  %v1792_v58 = vsel %vm365_vm11, 1.0, %v1561_v22  ;;  %s1260_s10 = sshll.u32 %s638_s13, 2 }
  0x4e   : > { %v1033_v55 = vrot.slane %v1032_v50, 2  ;;  %423 = vperm.xlu1 %1409, %v354_v30   ;;  %420 = vperm.xlu0 %1408, %v353_v31   ;;  %v1787_v56 = vadd.f32 %v1065_v48, %v1064_v53  ;;  %v1038_v57 = vsel %vm1018_vm1, %v1785_v54, 0.0  ;;  %v1037_v61 = vsel %vm1018_vm1, %v1792_v58, 0.0  ;;  %s641_s6 = scalar_lea.vmem %s2123_s2, %s1260_s10 }
  0x4f   : > { %v1024_v60 = vrot.slane %v1023_v52, 2  ;;  %vm368_vm12 = vcmp.lt.s32.totalorder %v352_v59, 64  ;;  %v1800_v0 = vadd.f32 %v1038_v57, %v1037_v61  ;;  %vm367_vm13 = vcmp.lt.s32.totalorder %v351_v2, 64  ;;  %1288 = vmatpush3.bf16.msra.mxu0 %v1411_v49  ;;  %1314 = vmatpush3.bf16.msra.mxu1 %v1411_v49 }
  0x50   : > { %v1034_v63 = vadd.f32 %v1033_v55, %v1032_v50  ;;  %v1803_v1 = vsel %vm368_vm12, 1.0, %v1561_v22  ;;  %v1809_v6 = vsel %vm367_vm13, 1.0, %v1561_v22  ;;  %vm374_vm14 = vcmp.lt.s32.totalorder %v358_v7, 64  ;;  %1289 = vmatprep.subr.bf16.mxu0 %v1412_v62  ;;  %1311 = vmatprep.subr.bf16.mxu1 %v1412_v62 }
  0x51   : > { %v1025_v3 = vadd.f32 %v1024_v60, %v1023_v52  ;;  %v1047_v4 = vsel %vm1018_vm1, %v1803_v1, 0.0  ;;  %v1046_v9 = vsel %vm1018_vm1, %v1809_v6, 0.0  ;;  %v1821_v15 = vsel %vm374_vm14, 1.0, %v1561_v22 }
  0x52   : > { %v1035_v5 = vrot.slane %v1034_v63, 1  ;;  %429 = vperm.xlu1 %1409, %v356_v34   ;;  %426 = vperm.xlu0 %1408, %v355_v38   ;;  %v1817_v12 = vadd.f32 %v1047_v4, %v1046_v9  ;;  %vm373_vm15 = vcmp.lt.s32.totalorder %v357_v13, 64  ;;  %vm1000_vm0 = vcmask 1041409  }
  0x53   : > { %v1026_v8 = vrot.slane %v1025_v3, 1  ;;  %1290 = vmatpush3.bf16.msra.mxu0 %v1412_v62  ;;  %1315 = vmatpush3.bf16.msra.mxu1 %v1412_v62  ;;  %v1074_v16 = vsel %vm1018_vm1, %v1821_v15, 0.0  ;;  %v1831_v19 = vsel %vm373_vm15, 1.0, %v1561_v22  ;;  %vm376_vm2 = vcmp.lt.s32.totalorder %v360_v17, 64 }
  0x54   : > { %v1036_v11 = vadd.f32 %v1035_v5, %v1034_v63  ;;  %1291 = vmatprep.subr.bf16.mxu0 %v1413_v10  ;;  %1312 = vmatprep.subr.bf16.mxu1 %v1413_v10  ;;  %v1073_v20 = vsel %vm1018_vm1, %v1831_v19, 0.0  ;;  %v1839_v27 = vsel %vm376_vm2, 1.0, %v1561_v22  ;;  %vm375_vm3 = vcmp.lt.s32.totalorder %v359_v21, 64 }
  0x55   : > { %v1027_v14 = vadd.f32 %v1026_v8, %v1025_v3  ;;  %v1836_v26 = vadd.f32 %v1074_v16, %v1073_v20  ;;  %v1083_v28 = vsel %vm1018_vm1, %v1839_v27, 0.0  ;;  %v1844_v30 = vsel %vm375_vm3, 1.0, %v1561_v22 }
  0x56   : > { %411 = vperm.xlu1 %1409, %v1758_v39   ;;  %408 = vperm.xlu0 %1408, %v349_v44   ;;  %v1082_v31 = vsel %vm1018_vm1, %v1844_v30, 0.0  ;;  %v393_v33 = vlaneseq  ;;  %vm515_vm8 = vcmask 523264  }
  0x57   : > { %v1828_v18 = vsel %vm1000_vm0, %v1036_v11, %v1027_v14  ;;  %1292 = vmatpush3.bf16.msra.mxu0 %v1413_v10  ;;  %1316 = vmatpush3.bf16.msra.mxu1 %v1413_v10  ;;  %v1848_v32 = vadd.f32 %v1083_v28, %v1082_v31 }
  0x58   : > { %v1850_v34 = vand.u32 127, %v393_v33 }
  0x5a   : > { %417 = vperm.xlu1 %1409, %v352_v59   ;;  %414 = vperm.xlu0 %1408, %v351_v2  }
  0x5e   : > { %435 = vperm.xlu1 %1409, %v358_v7   ;;  %432 = vperm.xlu0 %1408, %v357_v13  }
  0x62   : > { %441 = vperm.xlu1 %1409, %v360_v17   ;;  %438 = vperm.xlu0 %1408, %v359_v21  }
  0xc5   : > { %v403_v35 = vpop.permute.xlu1 %402  ;;  %v397_v38 = vpop.permute.xlu0 %396 }
  0xc6   : > { %vm445_vm4 = vcmp.eq.s32.totalorder %v1850_v34, %v403_v35  ;;  %vm443_vm5 = vcmp.eq.s32.totalorder %v1850_v34, %v397_v38  ;;  %v1270_v38 = vld [vmem:[%s641_s6] sm:$0xff]  }
  0xc7   : > { %v461_v41 = vsel %vm445_vm4, 1.0, %v1561_v22  ;;  %v459_v42 = vsel %vm443_vm5, 1.0, %v1561_v22 }
  0xc9   : > { %v406_v39 = vpop.permute.xlu1 %405  ;;  %v400_v40 = vpop.permute.xlu0 %399 }
  0xca   : > { %vm446_vm6 = vcmp.eq.s32.totalorder %v1850_v34, %v406_v39  ;;  %vm444_vm7 = vcmp.eq.s32.totalorder %v1850_v34, %v400_v40  ;;  %v1271_v39 = vunpack.c.l.bf16 %v1270_v38 }
  0xcb   : > { %v462_v44 = vsel %vm446_vm6, 1.0, %v1561_v22  ;;  %v460_v45 = vsel %vm444_vm7, 1.0, %v1561_v22  ;;  %vm1002_vm7 = vcmask 1042434  }
  0xcc   : > { %v476_v46 = vpack.c.bf16 %v462_v44, %v461_v41  ;;  %v475_v48 = vpack.c.bf16 %v460_v45, %v459_v42 }
  0xcd   : > { %v424_v49 = vpop.permute.xlu1 %423  ;;  %v421_v50 = vpop.permute.xlu0 %420 }
  0xce   : > { %vm452_vm9 = vcmp.eq.s32.totalorder %v1850_v34, %v424_v49  ;;  %vm451_vm10 = vcmp.eq.s32.totalorder %v1850_v34, %v421_v50  ;;  %1293 = vmatprep.mubr.msk.bf16.mxu0 %vm515_vm8, %v475_v48 }
  0xcf   : > { %v468_v52 = vsel %vm452_vm9, 1.0, %v1561_v22  ;;  %v467_v53 = vsel %vm451_vm10, 1.0, %v1561_v22  ;;  %1294 = vmatmul.mubr.msk.bf16.vlgmr.msra.gmra.mrb[0].mxu0 %vm515_vm8, %v476_v46  ;;  %vm1006_vm9 = vcmask 1044484   ;;  %vm1008_vm10 = vcmask 1045509  }
  0xd0   : > { %v479_v55 = vpack.c.bf16 %v468_v52, %v467_v53 }
  0xd1   : > { %v430_v57 = vpop.permute.xlu1 %429  ;;  %v427_v59 = vpop.permute.xlu0 %426 }
  0xd2   : > { %vm454_vm11 = vcmp.eq.s32.totalorder %v1850_v34, %v430_v57  ;;  %vm453_vm12 = vcmp.eq.s32.totalorder %v1850_v34, %v427_v59  ;;  %1301 = vmatprep.mubr.msk.bf16.mxu1 %vm515_vm8, %v479_v55 }
  0xd3   : > { %v470_v60 = vsel %vm454_vm11, 1.0, %v1561_v22  ;;  %v469_v61 = vsel %vm453_vm12, 1.0, %v1561_v22  ;;  %vm1010_vm11 = vcmask 1046534   ;;  %vm1012_vm12 = vcmask 1047559  }
  0xd4   : > { %v480_v62 = vpack.c.bf16 %v470_v60, %v469_v61 }
  0xd5   : > { %v412_v63 = vpop.permute.xlu1 %411  ;;  %v409_v2 = vpop.permute.xlu0 %408 }
  0xd6   : > { %vm448_vm13 = vcmp.eq.s32.totalorder %v1850_v34, %v412_v63  ;;  %vm447_vm14 = vcmp.eq.s32.totalorder %v1850_v34, %v409_v2  ;;  %1302 = vmatmul.mubr.msk.bf16.vlgmr.msra.gmra.mrb[0].mxu1 %vm515_vm8, %v480_v62 }
  0xd7   : > { %v464_v3 = vsel %vm448_vm13, 1.0, %v1561_v22  ;;  %v463_v4 = vsel %vm447_vm14, 1.0, %v1561_v22 }
  0xd8   : > { %v477_v5 = vpack.c.bf16 %v464_v3, %v463_v4 }
  0xd9   : > { %v418_v7 = vpop.permute.xlu1 %417  ;;  %v415_v8 = vpop.permute.xlu0 %414 }
  0xda   : > { %vm450_vm15 = vcmp.eq.s32.totalorder %v1850_v34, %v418_v7  ;;  %vm449_vm2 = vcmp.eq.s32.totalorder %v1850_v34, %v415_v8  ;;  %1297 = vmatprep.mubr.msk.bf16.mxu0 %vm515_vm8, %v477_v5 }
  0xdb   : > { %v466_v9 = vsel %vm450_vm15, 1.0, %v1561_v22  ;;  %v465_v10 = vsel %vm449_vm2, 1.0, %v1561_v22 }
  0xdc   : > { %v478_v11 = vpack.c.bf16 %v466_v9, %v465_v10 }
  0xdd   : > { %v436_v13 = vpop.permute.xlu1 %435  ;;  %v433_v14 = vpop.permute.xlu0 %432 }
  0xde   : > { %vm456_vm3 = vcmp.eq.s32.totalorder %v1850_v34, %v436_v13  ;;  %vm455_vm4 = vcmp.eq.s32.totalorder %v1850_v34, %v433_v14  ;;  %1298 = vmatmul.mubr.msk.bf16.gmra.mrb[4].mxu0 %vm515_vm8, %v478_v11 }
  0xdf   : > { %v472_v16 = vsel %vm456_vm3, 1.0, %v1561_v22  ;;  %v471_v17 = vsel %vm455_vm4, 1.0, %v1561_v22 }
  0xe0   : > { %v481_v20 = vpack.c.bf16 %v472_v16, %v471_v17 }
  0xe1   : > { %v442_v21 = vpop.permute.xlu1 %441  ;;  %v439_v28 = vpop.permute.xlu0 %438 }
  0xe2   : > { %vm458_vm5 = vcmp.eq.s32.totalorder %v1850_v34, %v442_v21  ;;  %vm457_vm6 = vcmp.eq.s32.totalorder %v1850_v34, %v439_v28  ;;  %1305 = vmatprep.mubr.msk.bf16.mxu1 %vm515_vm8, %v481_v20 }
  0xe3   : > { %v474_v31 = vsel %vm458_vm5, 1.0, %v1561_v22  ;;  %v473_v33 = vsel %vm457_vm6, 1.0, %v1561_v22  ;;  %v1272_v22 = vunpack.c.h.bf16 %v1270_v38 }
  0xe4   : > { %v482_v35 = vpack.c.bf16 %v474_v31, %v473_v33 }
  0xe6   : > { %1306 = vmatmul.mubr.msk.bf16.gmra.mrb[4].mxu1 %vm515_vm8, %v482_v35  ;;  %vm1004_vm8 = vcmask 1043459  }
 0x1a2   : > { %v1295_v40 = vpop.f32.mrb[0].mxu0 }
 0x1a3   : > { %v648_v34 = vadd.f32 %v1295_v40, %v1271_v39  ;;  %v574_v41 = vpop.f32.mrb[1].mxu0 }
 0x1a4   : > { %v1296_v42 = vpop.f32.mrb[2].mxu0  ;;  %v646_v45 = vadd.f32 %v1271_v39, %v574_v41 }
 0x1a5   : > { %666 = vadd.xlane.f32.xlu0 %v648_v34  ;;  %v577_v44 = vpop.f32.mrb[3].mxu0  ;;  %v649_v50 = vadd.f32 %v1296_v42, %v1272_v22 }
 0x1a6   : > { %v647_v60 = vadd.f32 %v1272_v22, %v577_v44 }
 0x1a9   : > { %662 = vadd.xlane.f32.xlu0 %v646_v45  ;;  %v1303_v46 = vpop.f32.mrb[0].mxu1 }
 0x1aa   : > { %v656_v48 = vadd.f32 %v1303_v46, %v1271_v39  ;;  %v606_v49 = vpop.f32.mrb[1].mxu1 }
 0x1ab   : > { %v1304_v52 = vpop.f32.mrb[2].mxu1  ;;  %v654_v55 = vadd.f32 %v1271_v39, %v606_v49 }
 0x1ac   : > { %682 = vadd.xlane.f32.xlu1 %v656_v48  ;;  %v609_v53 = vpop.f32.mrb[3].mxu1  ;;  %v657_v57 = vadd.f32 %v1304_v52, %v1272_v22 }
 0x1ad   : > { %668 = vadd.xlane.f32.xlu0 %v649_v50  ;;  %v1896_v62 = vadd.f32 %v1272_v22, %v609_v53 }
 0x1b0   : > { %678 = vadd.xlane.f32.xlu1 %v654_v55 }
 0x1b1   : > { %684 = vadd.xlane.f32.xlu0 %v657_v57  ;;  %v1299_v59 = vpop.f32.mrb[4].mxu0 }
 0x1b2   : > { %v590_v61 = vpop.f32.mrb[5].mxu0  ;;  %v652_v3 = vadd.f32 %v1299_v59, %v1271_v39 }
 0x1b3   : > { %v1300_v63 = vpop.f32.mrb[6].mxu0  ;;  %v1902_v7 = vadd.f32 %v1271_v39, %v590_v61 }
 0x1b4   : > { %664 = vadd.xlane.f32.xlu1 %v647_v60  ;;  %v593_v2 = vpop.f32.mrb[7].mxu0  ;;  %v1899_v4 = vadd.f32 %v1300_v63, %v1272_v22 }
 0x1b5   : > { %680 = vadd.xlane.f32.xlu0 %v1896_v62  ;;  %v1904_v9 = vadd.f32 %v1272_v22, %v593_v2 }
 0x1b8   : > { %674 = vadd.xlane.f32.xlu1 %v652_v3 }
 0x1b9   : > { %676 = vadd.xlane.f32.xlu0 %v1899_v4  ;;  %v1307_v5 = vpop.f32.mrb[4].mxu1 }
 0x1ba   : > { %v622_v8 = vpop.f32.mrb[5].mxu1  ;;  %v1914_v16 = vadd.f32 %v1307_v5, %v1271_v39 }
 0x1bb   : > { %v1308_v10 = vpop.f32.mrb[6].mxu1  ;;  %v1908_v13 = vadd.f32 %v1271_v39, %v622_v8 }
 0x1bc   : > { %670 = vadd.xlane.f32.xlu1 %v1902_v7  ;;  %v625_v11 = vpop.f32.mrb[7].mxu1  ;;  %v1916_v17 = vadd.f32 %v1308_v10, %v1272_v22 }
 0x1bd   : > { %672 = vadd.xlane.f32.xlu0 %v1904_v9  ;;  %v1910_v14 = vadd.f32 %v1272_v22, %v625_v11 }
 0x1c0   : > { %686 = vadd.xlane.f32.xlu1 %v1908_v13 }
 0x1c1   : > { %688 = vadd.xlane.f32.xlu0 %v1910_v14 }
 0x1c4   : > { %690 = vadd.xlane.f32.xlu1 %v1914_v16 }
 0x1c5   : > { %692 = vadd.xlane.f32.xlu0 %v1916_v17 }
 0x232   : > { %v667_v20 = vpop.xlane.xlu0 %666 }
 0x233   : > { %v697_v21 = vmul.f32 0.0078125, %v667_v20 }
 0x235   : > { %v1920_v28 = vsub.f32 %v648_v34, %v697_v21 }
 0x236   : > { %v663_v31 = vpop.xlane.xlu0 %662 }
 0x237   : > { %v729_v33 = vmul.f32 %v1920_v28, %v1920_v28  ;;  %v695_v38 = vmul.f32 0.0078125, %v663_v31 }
 0x239   : > { %v683_v35 = vpop.xlane.xlu1 %682  ;;  %747 = vadd.xlane.f32.xlu1 %v729_v33  ;;  %v1928_v46 = vsub.f32 %v646_v45, %v695_v38 }
 0x23a   : > { %v705_v40 = vmul.f32 0.0078125, %v683_v35  ;;  %v669_v39 = vpop.xlane.xlu0 %668 }
 0x23b   : > { %v698_v41 = vmul.f32 0.0078125, %v669_v39  ;;  %v727_v45 = vmul.f32 %v1928_v46, %v1928_v46 }
 0x23c   : > { %v1924_v42 = vsub.f32 %v656_v48, %v705_v40 }
 0x23d   : > { %v1926_v44 = vsub.f32 %v649_v50, %v698_v41  ;;  %v679_v22 = vpop.xlane.xlu1 %678 }
 0x23e   : > { %v703_v49 = vmul.f32 0.0078125, %v679_v22  ;;  %v685_v34 = vpop.xlane.xlu0 %684  ;;  %v737_v52 = vmul.f32 %v1924_v42, %v1924_v42 }
 0x23f   : > { %v706_v53 = vmul.f32 0.0078125, %v685_v34  ;;  %v730_v59 = vmul.f32 %v1926_v44, %v1926_v44 }
 0x240   : > { %763 = vadd.xlane.f32.xlu1 %v737_v52  ;;  %v1936_v48 = vsub.f32 %v654_v55, %v703_v49 }
 0x241   : > { %v1934_v61 = vsub.f32 %v657_v57, %v706_v53  ;;  %v665_v63 = vpop.xlane.xlu1 %664  ;;  %749 = vadd.xlane.f32.xlu0 %v730_v59 }
 0x242   : > { %v696_v50 = vmul.f32 0.0078125, %v665_v63  ;;  %v681_v2 = vpop.xlane.xlu0 %680  ;;  %v735_v55 = vmul.f32 %v1936_v48, %v1936_v48 }
 0x243   : > { %v704_v5 = vmul.f32 0.0078125, %v681_v2  ;;  %v738_v8 = vmul.f32 %v1934_v61, %v1934_v61 }
 0x244   : > { %v1942_v10 = vsub.f32 %v647_v60, %v696_v50  ;;  %743 = vadd.xlane.f32.xlu1 %v727_v45 }
 0x245   : > { %v675_v11 = vpop.xlane.xlu1 %674  ;;  %765 = vadd.xlane.f32.xlu0 %v738_v8  ;;  %v1949_v31 = vsub.f32 %v1896_v62, %v704_v5 }
 0x246   : > { %v701_v57 = vmul.f32 0.0078125, %v675_v11  ;;  %v677_v20 = vpop.xlane.xlu0 %676  ;;  %v728_v21 = vmul.f32 %v1942_v10, %v1942_v10 }
 0x247   : > { %v702_v33 = vmul.f32 0.0078125, %v677_v20  ;;  %v736_v49 = vmul.f32 %v1949_v31, %v1949_v31 }
 0x248   : > { %v1951_v35 = vsub.f32 %v652_v3, %v701_v57  ;;  %759 = vadd.xlane.f32.xlu1 %v735_v55 }
 0x249   : > { %v671_v60 = vpop.xlane.xlu1 %670  ;;  %745 = vadd.xlane.f32.xlu0 %v728_v21  ;;  %v1956_v41 = vsub.f32 %v1899_v4, %v702_v33 }
 0x24a   : > { %v699_v38 = vmul.f32 0.0078125, %v671_v60  ;;  %v673_v40 = vpop.xlane.xlu0 %672  ;;  %v733_v39 = vmul.f32 %v1951_v35, %v1951_v35 }
 0x24b   : > { %v700_v22 = vmul.f32 0.0078125, %v673_v40  ;;  %v734_v63 = vmul.f32 %v1956_v41, %v1956_v41 }
 0x24c   : > { %v1961_v62 = vsub.f32 %v1902_v7, %v699_v38  ;;  %755 = vadd.xlane.f32.xlu1 %v733_v39 }
 0x24d   : > { %v687_v3 = vpop.xlane.xlu1 %686  ;;  %761 = vadd.xlane.f32.xlu0 %v736_v49  ;;  %v1966_v59 = vsub.f32 %v1904_v9, %v700_v22 }
 0x24e   : > { %v707_v34 = vmul.f32 0.0078125, %v687_v3  ;;  %v689_v52 = vpop.xlane.xlu0 %688  ;;  %v731_v53 = vmul.f32 %v1961_v62, %v1961_v62 }
 0x24f   : > { %v708_v4 = vmul.f32 0.0078125, %v689_v52  ;;  %v732_v11 = vmul.f32 %v1966_v59, %v1966_v59 }
 0x250   : > { %v1971_v50 = vsub.f32 %v1908_v13, %v707_v34  ;;  %751 = vadd.xlane.f32.xlu1 %v731_v53 }
 0x251   : > { %v691_v7 = vpop.xlane.xlu1 %690  ;;  %757 = vadd.xlane.f32.xlu0 %v734_v63  ;;  %v1976_v8 = vsub.f32 %v1910_v14, %v708_v4 }
 0x252   : > { %v709_v2 = vmul.f32 0.0078125, %v691_v7  ;;  %v693_v45 = vpop.xlane.xlu0 %692  ;;  %v739_v5 = vmul.f32 %v1971_v50, %v1971_v50 }
 0x253   : > { %v710_v9 = vmul.f32 0.0078125, %v693_v45  ;;  %v740_v55 = vmul.f32 %v1976_v8, %v1976_v8 }
 0x254   : > { %v1981_v57 = vsub.f32 %v1914_v16, %v709_v2  ;;  %767 = vadd.xlane.f32.xlu1 %v739_v5 }
 0x255   : > { %753 = vadd.xlane.f32.xlu0 %v732_v11  ;;  %v1986_v20 = vsub.f32 %v1916_v17, %v710_v9 }
 0x256   : > { %v741_v13 = vmul.f32 %v1981_v57, %v1981_v57 }
 0x257   : > { %v742_v14 = vmul.f32 %v1986_v20, %v1986_v20 }
 0x258   : > { %771 = vadd.xlane.f32.xlu1 %v741_v13 }
 0x259   : > { %769 = vadd.xlane.f32.xlu0 %v740_v55 }
 0x25d   : > { %773 = vadd.xlane.f32.xlu0 %v742_v14 }
 0x2c6   : > { %v748_v21 = vpop.xlane.xlu1 %747 }
 0x2c7   : > { %v777_v16 = vmul.f32 0.0078125, %v748_v21 }
 0x2c9   : > { %v793_v33 = vadd.f32 1e-07, %v777_v16 }
 0x2cb   : > { %1414 = vrsqrt.f32 %v793_v33 }
 0x2cd   : > { %v764_v60 = vpop.xlane.xlu1 %763 }
 0x2ce   : > { %v785_v38 = vmul.f32 0.0078125, %v764_v60  ;;  %v750_v40 = vpop.xlane.xlu0 %749 }
 0x2cf   : > { %v778_v22 = vmul.f32 0.0078125, %v750_v40 }
 0x2d0   : > { %v801_v39 = vadd.f32 1e-07, %v785_v38 }
 0x2d1   : > { %v744_v17 = vpop.xlane.xlu1 %743  ;;  %v794_v52 = vadd.f32 1e-07, %v778_v22 }
 0x2d2   : > { %1416 = vrsqrt.f32 %v801_v39  ;;  %v775_v49 = vmul.f32 0.0078125, %v744_v17  ;;  %v766_v3 = vpop.xlane.xlu0 %765 }
 0x2d3   : > { %v786_v34 = vmul.f32 0.0078125, %v766_v3 }
 0x2d4   : > { %v791_v53 = vadd.f32 1e-07, %v775_v49 }
 0x2d5   : > { %v1415_v4 = vpop.eup %1414  ;;  %v760_v63 = vpop.xlane.xlu1 %759  ;;  %v802_v5 = vadd.f32 1e-07, %v786_v34 }
 0x2d6   : > { %1418 = vrsqrt.f32 %v791_v53  ;;  %v783_v7 = vmul.f32 0.0078125, %v760_v63  ;;  %v746_v2 = vpop.xlane.xlu0 %745  ;;  %v825_v45 = vmul.f32 %v1415_v4, %v1728_v23 }
 0x2d7   : > { %v776_v9 = vmul.f32 0.0078125, %v746_v2  ;;  %1420 = vrsqrt.f32 %v794_v52 }
 0x2d8   : > { %v799_v11 = vadd.f32 1e-07, %v783_v7  ;;  %852 = vperm.xlu1 %1409, %v825_v45  }
 0x2d9   : > { %v792_v13 = vadd.f32 1e-07, %v776_v9  ;;  %v756_v55 = vpop.xlane.xlu1 %755 }
 0x2da   : > { %1422 = vrsqrt.f32 %v799_v11  ;;  %v781_v14 = vmul.f32 0.0078125, %v756_v55  ;;  %v762_v21 = vpop.xlane.xlu0 %761 }
 0x2db   : > { %1424 = vrsqrt.f32 %v802_v5  ;;  %v784_v16 = vmul.f32 0.0078125, %v762_v21 }
 0x2dc   : > { %v1417_v33 = vpop.eup %1416  ;;  %1426 = vrsqrt.f32 %v792_v13  ;;  %v797_v60 = vadd.f32 1e-07, %v781_v14 }
 0x2dd   : > { %v800_v38 = vadd.f32 1e-07, %v784_v16  ;;  %v752_v40 = vpop.xlane.xlu1 %751  ;;  %v833_v39 = vmul.f32 %v1417_v33, %v1779_v51 }
 0x2de   : > { %v779_v23 = vmul.f32 0.0078125, %v752_v40  ;;  %v758_v22 = vpop.xlane.xlu0 %757  ;;  %1428 = vrsqrt.f32 %v797_v60 }
 0x2df   : > { %v782_v17 = vmul.f32 0.0078125, %v758_v22  ;;  %892 = vperm.xlu0 %1408, %v833_v39   ;;  %1430 = vrsqrt.f32 %v800_v38 }
 0x2e0   : > { %v1419_v49 = vpop.eup %1418  ;;  %v795_v3 = vadd.f32 1e-07, %v779_v23 }
 0x2e1   : > { %v798_v34 = vadd.f32 1e-07, %v782_v17  ;;  %v768_v52 = vpop.xlane.xlu1 %767  ;;  %v823_v53 = vmul.f32 %v1419_v49, %v1731_v24  ;;  %v1421_v4 = vpop.eup %1420  ;;  %v1049_v17 = vrot.slane %v1817_v12, 4 }
 0x2e2   : > { %v787_v63 = vmul.f32 0.0078125, %v768_v52  ;;  %v754_v7 = vpop.xlane.xlu0 %753  ;;  %1432 = vrsqrt.f32 %v795_v3  ;;  %v826_v55 = vmul.f32 %v1421_v4, %v1734_v25 }
 0x2e3   : > { %v780_v2 = vmul.f32 0.0078125, %v754_v7  ;;  %842 = vperm.xlu1 %1409, %v823_v53   ;;  %1434 = vrsqrt.f32 %v798_v34  ;;  %v1050_v53 = vadd.f32 %v1049_v17, %v1817_v12  ;;  %v1085_v12 = vrot.slane %v1848_v32, 4 }
 0x2e4   : > { %v1423_v45 = vpop.eup %1422  ;;  %v803_v51 = vadd.f32 1e-07, %v787_v63 }
 0x2e5   : > { %v1425_v5 = vpop.eup %1424  ;;  %v796_v9 = vadd.f32 1e-07, %v780_v2  ;;  %v772_v11 = vpop.xlane.xlu1 %771  ;;  %v831_v13 = vmul.f32 %v1423_v45, %v1754_v37  ;;  %v1040_v37 = vrot.slane %v1800_v0, 4  ;;  %v1058_v45 = vrot.slane %v1771_v47, 4 }
 0x2e6   : > { %v1427_v14 = vpop.eup %1426  ;;  %v789_v21 = vmul.f32 0.0078125, %v772_v11  ;;  %v770_v16 = vpop.xlane.xlu0 %769  ;;  %1436 = vrsqrt.f32 %v803_v51  ;;  %v834_v39 = vmul.f32 %v1425_v5, %v1765_v43 }
 0x2e7   : > { %v788_v24 = vmul.f32 0.0078125, %v770_v16  ;;  %882 = vperm.xlu0 %1408, %v831_v13   ;;  %857 = vperm.xlu1 %1409, %v826_v55   ;;  %1438 = vrsqrt.f32 %v796_v9  ;;  %v824_v40 = vmul.f32 %v1427_v14, %v1743_v29  ;;  %v1041_v43 = vadd.f32 %v1040_v37, %v1800_v0 }
 0x2e8   : > { %v805_v33 = vadd.f32 1e-07, %v789_v21  ;;  %v1429_v60 = vpop.eup %1428  ;;  %v1076_v0 = vrot.slane %v1836_v26, 4  ;;  %v1086_v16 = vadd.f32 %v1085_v12, %v1848_v32 }
 0x2e9   : > { %v804_v38 = vadd.f32 1e-07, %v788_v24  ;;  %v1431_v23 = vpop.eup %1430  ;;  %v829_v34 = vmul.f32 %v1429_v60, %v1809_v6  ;;  %v1067_v6 = vrot.slane %v1787_v56, 4  ;;  %v1042_v51 = vrot.slane %v1041_v43, 2 }
 0x2ea   : > { %v774_v22 = vpop.xlane.xlu0 %773  ;;  %1440 = vrsqrt.f32 %v805_v33  ;;  %v832_v52 = vmul.f32 %v1431_v23, %v1751_v36  ;;  %v1051_v36 = vrot.slane %v1050_v53, 2  ;;  %v1077_v21 = vadd.f32 %v1076_v0, %v1836_v26 }
 0x2eb   : > { %v790_v25 = vmul.f32 0.0078125, %v774_v22  ;;  %847 = vperm.xlu0 %1408, %v824_v40   ;;  %897 = vperm.xlu1 %1409, %v834_v39   ;;  %1442 = vrsqrt.f32 %v804_v38  ;;  %v1068_v13 = vadd.f32 %v1067_v6, %v1787_v56  ;;  %v1043_v55 = vadd.f32 %v1042_v51, %v1041_v43 }
 0x2ec   : > { %v1433_v49 = vpop.eup %1432  ;;  %v1052_v14 = vadd.f32 %v1051_v36, %v1050_v53  ;;  %v1078_v56 = vrot.slane %v1077_v21, 2  ;;  %v1087_v40 = vrot.slane %v1086_v16, 2 }
 0x2ed   : > { %v806_v3 = vadd.f32 1e-07, %v790_v25  ;;  %v1435_v29 = vpop.eup %1434  ;;  %v827_v63 = vmul.f32 %v1433_v49, %v1792_v58  ;;  %v1044_v38 = vrot.slane %v1043_v55, 1 }
 0x2ee   : > { %v830_v7 = vmul.f32 %v1435_v29, %v1803_v1  ;;  %v1059_v1 = vadd.f32 %v1058_v45, %v1771_v47  ;;  %v1053_v47 = vrot.slane %v1052_v14, 1  ;;  %v1079_v37 = vadd.f32 %v1078_v56, %v1077_v21 }
 0x2ef   : > { %872 = vperm.xlu0 %1408, %v829_v34   ;;  %887 = vperm.xlu1 %1409, %v832_v52   ;;  %1444 = vrsqrt.f32 %v806_v3  ;;  %v1045_v26 = vadd.f32 %v1044_v38, %v1043_v55 }
 0x2f0   : > { %v1437_v4 = vpop.eup %1436  ;;  %v1060_v60 = vrot.slane %v1059_v1, 2  ;;  %v1054_v32 = vadd.f32 %v1053_v47, %v1052_v14  ;;  %v1080_v49 = vrot.slane %v1079_v37, 1 }
 0x2f1   : > { %v1439_v2 = vpop.eup %1438  ;;  %v835_v9 = vmul.f32 %v1437_v4, %v1831_v19  ;;  %v1100_v17 = vsel %vm1002_vm7, %v1045_v26, %v1828_v18 }
 0x2f2   : > { %v828_v58 = vmul.f32 %v1439_v2, %v1785_v54  ;;  %v1069_v54 = vrot.slane %v1068_v13, 2  ;;  %v1061_v23 = vadd.f32 %v1060_v60, %v1059_v1  ;;  %v1101_v3 = vsel %vm1004_vm8, %v1054_v32, %v1100_v17 }
 0x2f3   : > { %862 = vperm.xlu0 %1408, %v827_v63   ;;  %877 = vperm.xlu1 %1409, %v830_v7   ;;  %v1081_v29 = vadd.f32 %v1080_v49, %v1079_v37  ;;  %v1017_v63 = vld [vmem:[#allocation3] sm:$0xff] }
 0x2f4   : > { %v1441_v5 = vpop.eup %1440  ;;  %v1070_v22 = vadd.f32 %v1069_v54, %v1068_v13  ;;  %v1062_v25 = vrot.slane %v1061_v23, 1 }
 0x2f5   : > { %v1443_v11 = vpop.eup %1442  ;;  %v837_v24 = vmul.f32 %v1441_v5, %v1844_v30  ;;  %v1088_v30 = vadd.f32 %v1087_v40, %v1086_v16 }
 0x2f6   : > { %v836_v33 = vmul.f32 %v1443_v11, %v1821_v15  ;;  %v1071_v15 = vrot.slane %v1070_v22, 1  ;;  %v1063_v52 = vadd.f32 %v1062_v25, %v1061_v23 }
 0x2f7   : > { %902 = vperm.xlu0 %1408, %v835_v9   ;;  %867 = vperm.xlu1 %1409, %v828_v58   ;;  %v1089_v34 = vrot.slane %v1088_v30, 1 }
 0x2f8   : > { %v1102_v53 = vsel %vm1006_vm9, %v1063_v52, %v1101_v3 }
 0x2f9   : > { %v1445_v19 = vpop.eup %1444  ;;  %v1090_v43 = vadd.f32 %v1089_v34, %v1088_v30 }
 0x2fa   : > { %v838_v39 = vmul.f32 %v1445_v19, %v1839_v27  ;;  %v1072_v27 = vadd.f32 %v1071_v15, %v1070_v22 }
 0x2fb   : > { %912 = vperm.xlu0 %1408, %v837_v24   ;;  %907 = vperm.xlu1 %1409, %v836_v33  }
 0x2fc   : > { %v1103_v4 = vsel %vm1008_vm10, %v1072_v27, %v1102_v53 }
 0x2fd   : > { %v1104_v7 = vsel %vm1010_vm11, %v1081_v29, %v1103_v4 }
 0x2fe   : > { %v1105_v18 = vsel %vm1012_vm12, %v1090_v43, %v1104_v7 }
 0x2ff   : > { %917 = vperm.xlu1 %1409, %v838_v39   ;;  %v1107_v2 = vadd.f32 %v1105_v18, %v1017_v63 }
 0x301   : > { %1108 = vst.msk [vmem:[#allocation3] sm:$0xff] %vm1018_vm1, %v1107_v2 }
 0x357   : > { %v853_v45 = vpop.permute.xlu1 %852 }
 0x358   : > { %v922_v12 = vmul.f32 %v853_v45, %v1920_v28 }
 0x35e   : > { %v893_v6 = vpop.permute.xlu0 %892 }
 0x35f   : > { %v930_v24 = vmul.f32 %v893_v6, %v1924_v42 }
 0x362   : > { %v843_v51 = vpop.permute.xlu1 %842 }
 0x363   : > { %v920_v11 = vmul.f32 %v843_v51, %v1928_v46 }
 0x366   : > { %v883_v36 = vpop.permute.xlu0 %882  ;;  %v858_v0 = vpop.permute.xlu1 %857 }
 0x367   : > { %v923_v5 = vmul.f32 %v858_v0, %v1926_v44  ;;  %v928_v19 = vmul.f32 %v883_v36, %v1936_v48 }
 0x369   : > { %v943_v13 = vadd.f32 %v923_v5, %v922_v12 }
 0x36a   : > { %v848_v9 = vpop.permute.xlu0 %847  ;;  %v898_v58 = vpop.permute.xlu1 %897 }
 0x36b   : > { %v921_v1 = vmul.f32 %v848_v9, %v1942_v10  ;;  %v931_v14 = vmul.f32 %v898_v58, %v1934_v61  ;;  %v944_v44 = vrot.slane %v943_v13, 4 }
 0x36d   : > { %v936_v55 = vadd.f32 %v921_v1, %v920_v11  ;;  %v971_v60 = vadd.f32 %v931_v14, %v930_v24  ;;  %v945_v10 = vadd.f32 %v944_v44, %v943_v13 }
 0x36e   : > { %v873_v21 = vpop.permute.xlu0 %872  ;;  %v888_v16 = vpop.permute.xlu1 %887 }
 0x36f   : > { %v937_v33 = vrot.slane %v936_v55, 4  ;;  %v929_v28 = vmul.f32 %v888_v16, %v1949_v31  ;;  %v926_v56 = vmul.f32 %v873_v21, %v1951_v35  ;;  %v972_v39 = vrot.slane %v971_v60, 4 }
 0x370   : > { %v946_v37 = vrot.slane %v945_v10, 2 }
 0x371   : > { %v938_v54 = vadd.f32 %v937_v33, %v936_v55  ;;  %v964_v38 = vadd.f32 %v929_v28, %v928_v19  ;;  %v973_v25 = vadd.f32 %v972_v39, %v971_v60 }
 0x372   : > { %v863_v46 = vpop.permute.xlu0 %862  ;;  %v878_v47 = vpop.permute.xlu1 %877  ;;  %v947_v27 = vadd.f32 %v946_v37, %v945_v10 }
 0x373   : > { %v965_v40 = vrot.slane %v964_v38, 4  ;;  %v927_v61 = vmul.f32 %v878_v47, %v1956_v41  ;;  %v939_v23 = vrot.slane %v938_v54, 2  ;;  %v924_v32 = vmul.f32 %v863_v46, %v1961_v62 }
 0x374   : > { %v974_v53 = vrot.slane %v973_v25, 2 }
 0x375   : > { %v966_v42 = vadd.f32 %v965_v40, %v964_v38  ;;  %v957_v22 = vadd.f32 %v927_v61, %v926_v56  ;;  %v940_v17 = vadd.f32 %v939_v23, %v938_v54  ;;  %v839_v40 = vld [vmem:[#allocation2] sm:$0xff] }
 0x376   : > { %v903_v26 = vpop.permute.xlu0 %902  ;;  %v868_v48 = vpop.permute.xlu1 %867  ;;  %v975_v36 = vadd.f32 %v974_v53, %v973_v25 }
 0x377   : > { %v925_v31 = vmul.f32 %v868_v48, %v1966_v59  ;;  %v958_v30 = vrot.slane %v957_v22, 4  ;;  %v967_v49 = vrot.slane %v966_v42, 2  ;;  %v932_v41 = vmul.f32 %v903_v26, %v1971_v50  ;;  %v1262_v48 = vld [vmem:[%s2124_s3] ss:$0 sm:$0xff] (!%p1261_p4) }
 0x378   : > { %v941_v59 = vrot.slane %v940_v17, 1  ;;  %v948_v50 = vrot.slane %v947_v27, 1  ;;  %v976_v14 = vrot.slane %v975_v36, 1  ;;  %v1562_v26 = vmov (!%p1261_p4), 0  }
 0x379   : > { %v950_v15 = vadd.f32 %v925_v31, %v924_v32  ;;  %v959_v35 = vadd.f32 %v958_v30, %v957_v22  ;;  %v968_v63 = vadd.f32 %v967_v49, %v966_v42  ;;  %v1123_v22 = vld [vmem:[#allocation3] sm:$0xff] (!%p1261_p4)  ;;  %1446 = vset.pattern.permute.xlu0 (!%p1261_p4), %v1562_v26  ;;  %v1263_v31 = vld [vmem:[%s2125_s4] ss:$0 sm:$0xff] (!%p1261_p4) }
 0x37a   : > { %v908_v3 = vpop.permute.xlu1 %907  ;;  %v913_v43 = vpop.permute.xlu0 %912  ;;  %v942_v12 = vadd.f32 %v941_v59, %v940_v17  ;;  %v949_v55 = vadd.f32 %v948_v50, %v947_v27  ;;  %v977_v54 = vadd.f32 %v976_v14, %v975_v36  ;;  %1132 = vperm.xlu0 (!%p1261_p4), %1446, %v1123_v22  }
 0x37b   : > { %v951_v34 = vrot.slane %v950_v15, 4  ;;  %v933_v52 = vmul.f32 %v908_v3, %v1976_v8  ;;  %v960_v29 = vrot.slane %v959_v35, 2  ;;  %v934_v45 = vmul.f32 %v913_v43, %v1981_v57 }
 0x37c   : > { %v969_v58 = vrot.slane %v968_v63, 1  ;;  %v1001_v57 = vsel %vm1000_vm0, %v949_v55, %v942_v12 }
 0x37d   : > { %v952_v62 = vadd.f32 %v951_v34, %v950_v15  ;;  %v978_v4 = vadd.f32 %v933_v52, %v932_v41  ;;  %v961_v7 = vadd.f32 %v960_v29, %v959_v35 }
 0x37e   : > { %v918_v18 = vpop.permute.xlu1 %917 }
 0x37f   : > { %v953_v2 = vrot.slane %v952_v62, 2  ;;  %v979_v6 = vrot.slane %v978_v4, 4  ;;  %v935_v51 = vmul.f32 %v918_v18, %v1986_v20  ;;  %v962_v9 = vrot.slane %v961_v7, 1 }
 0x380   : > { %v970_v20 = vadd.f32 %v969_v58, %v968_v63 }
 0x381   : > { %v954_v0 = vadd.f32 %v953_v2, %v952_v62  ;;  %v980_v8 = vadd.f32 %v979_v6, %v978_v4  ;;  %v985_v5 = vadd.f32 %v935_v51, %v934_v45  ;;  %v963_v33 = vadd.f32 %v962_v9, %v961_v7 }
 0x383   : > { %v955_v11 = vrot.slane %v954_v0, 1  ;;  %v981_v1 = vrot.slane %v980_v8, 2  ;;  %v986_v13 = vrot.slane %v985_v5, 4 }
 0x385   : > { %v956_v21 = vadd.f32 %v955_v11, %v954_v0  ;;  %v982_v16 = vadd.f32 %v981_v1, %v980_v8  ;;  %v987_v24 = vadd.f32 %v986_v13, %v985_v5 }
 0x387   : > { %v1003_v19 = vsel %vm1002_vm7, %v956_v21, %v1001_v57  ;;  %v983_v44 = vrot.slane %v982_v16, 1  ;;  %v988_v28 = vrot.slane %v987_v24, 2 }
 0x388   : > { %v1005_v60 = vsel %vm1004_vm8, %v963_v33, %v1003_v19 }
 0x389   : > { %v1007_v38 = vsel %vm1006_vm9, %v970_v20, %v1005_v60  ;;  %v989_v46 = vadd.f32 %v988_v28, %v987_v24  ;;  %v984_v47 = vadd.f32 %v983_v44, %v982_v16 }
 0x38a   : > { %v1009_v10 = vsel %vm1008_vm10, %v977_v54, %v1007_v38 }
 0x38b   : > { %v990_v56 = vrot.slane %v989_v46, 1  ;;  %v1011_v39 = vsel %vm1010_vm11, %v984_v47, %v1009_v10 }
 0x38c   : > { %1112 = sbr.rel (%p1261_p4) target bundleno = 1025 (0x401), region = 86 }
 0x38d   : > { %v991_v61 = vadd.f32 %v990_v56, %v989_v46 }
 0x38f   : > { %v1013_v23 = vsel %vm1012_vm12, %v991_v61, %v1011_v39 }
 0x390   : > { %v1015_v42 = vadd.f32 %v1013_v23, %v839_v40 }
 0x392   : > { %1016 = vst [vmem:[#allocation2] sm:$0xff] %v1015_v42 }
 0x399   : > { %v1114_v32 = vld [vmem:[#allocation2] sm:$0xff] }
 0x39a   : > { %v1121_v37 = vmul.f32 %v1262_v48, %v1114_v32 }
 0x3f9   : > { %v1133_v30 = vpop.permute.xlu0 %1132 }
 0x3fa   : > { %v1135_v25 = vmul.f32 %v1263_v31, %v1133_v30 }
 0x3fc   : > { %v1136_v15 = vadd.f32 %v1135_v25, %v1121_v37 }
 0x3fe   : > { %v1137_v17 = vmul.f32 0.03125, %v1136_v15 }
 0x400   : > { %1138 = vst [vmem:[%s334_s12] sm:$0xff] %v1137_v17 }
 0x401 PF: > { %s1265_s23 = sshll.u32 %s1545_s24, 7  ;;  %s1153_s6 = sshll.u32 %s334_s12, 4  ;;  %s1154_s6 = int_to_ptr.vmem [resolvable:$true] %s1153_s6 }
 0x402   : > { %s2064_s9 = scalar_lea.hbm %s2126_s5, %s1265_s23  ;;  %s1140_s28 = scalar_lea.sflag [#allocation6], %s332_s17 }
 0x403   : > { %s1447_s21 = scalar_lea.vmem %s1154_s6, 128  ;;  %s1563_s8 = smov [#allocation5]  }
 0x404   : > { %p1448_p5 = scmp.ne.s32.totalorder %s1154_s6, %s1447_s21  ;;  %s1451_s13 = sshll.u32 %s1563_s8, 4  ;;  %s1452_s13 = int_to_ptr.vmem [resolvable:$false] %s1451_s13 }
 0x405   : > { %s1453_s0 = scalar_lea.vmem %s1452_s13, 256  ;;  %p1454_p9 = scmp.lt.s32.totalorder %s1154_s6, %s1452_s13 }
 0x406   : > { %p1449_p6 = pnand %p1448_p5, %p1666_p7  ;;  %p1455_p10 = scmp.lt.s32.totalorder %s1453_s0, %s1447_s21 }
 0x408   : > { %p1450_p8 = pneg %p1449_p6  ;;  %p1456_p11 = por %p1455_p10, %p1454_p9 }
 0x40a   : > { %p1457_p13 = pnand %p1456_p11, %p1450_p8 }
 0x40c   : > { %1460 = shalt.err (!%p1457_p13)
}
 0x40d   : > { %s1461_s24 = scalar_lea.hbm %s2064_s9, 128  ;;  %s1465_s12 = scalar_lea.hbm %s2126_s5, 256 }
 0x40e   : > { %p1462_p0 = scmp.ne.s32.totalorder %s2064_s9, %s1461_s24  ;;  %p1466_p3 = scmp.lt.u32.totalorder %s2064_s9, %s2126_s5 }
 0x40f   : > { %p1467_p4 = scmp.lt.u32.totalorder %s1465_s12, %s1461_s24  ;;  %p1469_p6 = scmp.lt.u32.totalorder %s1461_s24, %s2064_s9 }
 0x410   : > { %p1463_p1 = pnand %p1462_p0, %p1666_p7 }
 0x411   : > { %p1468_p5 = por %p1467_p4, %p1466_p3 }
 0x412   : > { %p1464_p2 = pneg %p1463_p1 }
 0x413   : > { %p1470_p8 = por %p1469_p6, %p1468_p5 }
 0x415   : > { %p1471_p9 = pnand %p1470_p8, %p1464_p2 }
 0x417   : > { %1474 = shalt.err (!%p1471_p9)
}
 0x418   : > { %1317 = dma.vmem_to_hbm [thread:$0]  (%p1666_p7), %s1154_s6, 128, %s2064_s9, %s1140_s28  }
 0x419 PF: > { %p1323_p10 = scmp.ge.s32.totalorder %s1557_s27, 2  ;;  %s1165_s0 = sand.u32 1, %s1521_s18  }
 0x41a   : > { %s1166_s7 = scalar_lea.sflag [#allocation6], %s1165_s0 }
 0x41b   : > { %p1320_p11 = pnand %p1323_p10, %p1674_p12 }
 0x41d   : > { %1516 = dma.done.wait (!%p1320_p11), %s1166_s7, 128  }
 0x41e   : > { %1518 = vsyncadd (!%p1320_p11), %s1166_s7, 4294967168  ;;  %s18_s27 = sadd.s32 1, %s1557_s27   ;;  %s2134_s11 = sld [smem:[#allocation8_spill]] }
 0x41f   : > { %p15_p13 = scmp.ge.s32.totalorder %s18_s27, 6   ;;  %s2135_s18 = smov %s1525_s19 }
 0x420   : > { %s2136_s19 = smov %s1529_s20  ;;  %s2137_s20 = smov %s1679_s15 }
 0x421   : > { %s2138_s21 = smov %s1537_s22  ;;  %s2139_s22 = smov %s1682_s16 }
 0x422   : > { %s2140_s23 = smov %s1549_s25  ;;  %s2141_s24 = smov %s1553_s26 }
 0x423   : > { %s2142_s25 = smov %s2145_s30  ;;  %17 = sbr.rel (!%p15_p13) target bundleno = 8 (0x8), region = 127 }
 0x424   : > { %s2143_s26 = smov %s2134_s11 }
 0x42a   :  { %1171 = vsyncpa [#allocation6], 1 }
 0x42b   :  { %1173 = vsyncpa [#allocation6 + $0x1], 1 }

</bundles_post_ra>
